<compile_context>
chip_gen: v5e
topology: v5e:2x2
jax: 0.10.0
libtpu: 0.0.40
codegen_flags: <defaults>
</compile_context>

<pallas_src>
import jax
import jax.numpy as jnp
from jax.experimental import pallas as pl
from jax.experimental.pallas import tpu as pltpu


def _conv1x1_sigmoid_kernel(x_ref, w_ref, b_ref, o_ref):
    # x_ref: (bn, C_in,  T)   VMEM  -- bn images, T lane-dense pixels each
    # w_ref: (C_out, C_in)    VMEM  -- tiny, resident across the whole grid
    # b_ref: (C_out, 1)       VMEM  -- f32 bias column (lane-broadcast)
    # o_ref: (bn, C_out, T)   VMEM
    w = w_ref[...]
    b = b_ref[...]                                  # already f32
    bn = x_ref.shape[0]                             # static (block shape)
    for i in range(bn):                             # small static unroll
        # (C_out, C_in) @ (C_in, T) -> dense (C_out, T), f32 acc on the MXU.
        acc = jnp.dot(w, x_ref[i], preferred_element_type=jnp.float32)
        acc = acc + b
        o_ref[i] = jax.nn.sigmoid(acc).astype(o_ref.dtype)


def conv_out_forward(
    x,
    weight,
    bias,
    *,
    target_step_bytes=4 * 1024 * 1024,   # ~4 MiB HBM traffic per grid step
    vmem_budget_bytes=12 * 1024 * 1024,  # double-buffered in+out blocks; <16 MiB (v5e)
):
    """1x1 conv (NCHW) + sigmoid, fused in one Pallas kernel.

    x:      (N, C_in, H, W)
    weight: (C_out, C_in, 1, 1)   (PyTorch Conv2d layout)
    bias:   (C_out,)
    returns (N, C_out, H, W), dtype follows x.dtype
    """
    N, C_in, H, W = x.shape
    C_out = weight.shape[0]
    HW = H * W

    # Free reshape: fold H,W into one trailing "pixels" axis (channels on
    # sublanes, pixels on lanes).  No data movement, no padding, no slicing.
    x_rows = x.reshape(N, C_in, HW)

    w_mat = weight.reshape(C_out, C_in).astype(x.dtype)   # (C_out, C_in)
    b_col = bias.reshape(C_out, 1).astype(jnp.float32)    # (C_out, 1), f32

    # --- block sizing -----------------------------------------------------
    itemsize = jnp.dtype(x.dtype).itemsize
    bytes_per_px = (C_in + C_out) * itemsize               # in+out HBM bytes / pixel
    # Largest block (in pixels per image-slot) whose double-buffered
    # input+output VMEM footprint stays within the budget.
    max_block_px = max(128, vmem_budget_bytes // (2 * bytes_per_px))
    target_px = max(128, min(target_step_bytes // bytes_per_px, max_block_px))

    if HW <= max_block_px:
        # One (or several) whole images per step.  tile == full trailing dim,
        # which is exempt from the 128-divisibility rule -> no lane padding.
        tile = HW
        bn = min(N, max(1, target_px // HW))
        if N >= 2:
            # Keep >= 2 grid steps so v7x megacore gets both cores busy.
            bn = min(bn, max(1, N // 2))
    else:
        # Image too large for one block: lane-dense tile, multiple of 128.
        # Pallas masks the partial last block (per-pixel op -> safe).
        tile = max(128, (target_px // 128) * 128)
        bn = 1

    grid = (pl.cdiv(N, bn), pl.cdiv(HW, tile))

    out = pl.pallas_call(
        _conv1x1_sigmoid_kernel,
        out_shape=jax.ShapeDtypeStruct((N, C_out, HW), x.dtype),
        grid=grid,
        in_specs=[
            pl.BlockSpec((bn, C_in, tile), lambda n, j: (n, 0, j)),
            pl.BlockSpec((C_out, C_in), lambda n, j: (0, 0)),
            pl.BlockSpec((C_out, 1), lambda n, j: (0, 0)),
        ],
        out_specs=pl.BlockSpec((bn, C_out, tile), lambda n, j: (n, 0, j)),
        # Both axes are independent -> megacore sharding on v7x.  Blocks are
        # sized to stay under every chip's scoped-VMEM default, so no
        # explicit vmem_limit_bytes is needed.
        compiler_params=pltpu.CompilerParams(
            dimension_semantics=("parallel", "parallel")),
    )(x_rows, w_mat, b_col)

    # Free reshape back to NCHW.
    return out.reshape(N, C_out, H, W)


if __name__ == "__main__":
    key = jax.random.PRNGKey(0)
    k_x, k_w, k_b = jax.random.split(key, 3)

    # Small shapes consistent with the module: batch=2, in_channels=4,
    # out_channels=8, spatial=16x16.
    N, C_in, C_out, H, W = 2, 4, 8, 16, 16

    x = jax.random.normal(k_x, (N, C_in, H, W), dtype=jnp.float32)
    weight = jax.random.normal(k_w, (C_out, C_in, 1, 1), dtype=jnp.float32) * 0.1
    bias = jax.random.normal(k_b, (C_out,), dtype=jnp.float32) * 0.1

    out = conv_out_forward(x, weight, bias)
    jax.block_until_ready(out)

    # Pure-JAX reference for sanity check.
    ref = jax.nn.sigmoid(
        jnp.einsum("nchw,oc->nohw", x, weight.reshape(C_out, C_in))
        + bias.reshape(1, C_out, 1, 1)
    )
    assert out.shape == (N, C_out, H, W)
    assert jnp.allclose(out, ref, atol=1e-5, rtol=1e-5)

    print("KERNEL_OK")
</pallas_src>

<mosaic_0001>
module attributes {stable_mosaic.version = 11 : i64} {
  func.func @_conv1x1_sigmoid_kernel(%arg0: i32, %arg1: i32, %arg2: memref<1x4x256xf32, #tpu.memory_space<vmem>>, %arg3: memref<8x4xf32, #tpu.memory_space<vmem>>, %arg4: memref<8x1xf32, #tpu.memory_space<vmem>>, %arg5: memref<1x8x256xf32, #tpu.memory_space<vmem>>) attributes {dimension_semantics = [#tpu.dimension_semantics<parallel>, #tpu.dimension_semantics<parallel>], iteration_bounds = array<i64: 2, 1>, scalar_prefetch = 0 : i64, scratch_operands = 0 : i64, tpu.core_type = #tpu.core_type<tc>, window_params = [{transform_indices = @transform_0, window_bounds = array<i64: 1, 4, 256>}, {pipeline_mode = #tpu.pipeline_mode<synchronous>, transform_indices = @transform_1, window_bounds = array<i64: 8, 4>}, {pipeline_mode = #tpu.pipeline_mode<synchronous>, transform_indices = @transform_2, window_bounds = array<i64: 8, 1>}, {transform_indices = @transform_3, window_bounds = array<i64: 1, 8, 256>}]} {
    %c0 = arith.constant 0 : index
    %c0_0 = arith.constant 0 : index
    %0 = vector.load %arg3[%c0, %c0_0] : memref<8x4xf32, #tpu.memory_space<vmem>>, vector<8x4xf32>
    %c0_1 = arith.constant 0 : index
    %c0_2 = arith.constant 0 : index
    %1 = vector.load %arg4[%c0_1, %c0_2] : memref<8x1xf32, #tpu.memory_space<vmem>>, vector<8x1xf32>
    %c0_3 = arith.constant 0 : index
    %c0_4 = arith.constant 0 : index
    %c0_5 = arith.constant 0 : index
    %2 = vector.load %arg2[%c0_3, %c0_4, %c0_5] : memref<1x4x256xf32, #tpu.memory_space<vmem>>, vector<1x4x256xf32>
    %3 = vector.shape_cast %2 : vector<1x4x256xf32> to vector<4x256xf32>
    %cst = arith.constant dense<0.000000e+00> : vector<8x256xf32>
    %4 = tpu.matmul %0, %3, %cst {dimension_numbers = #tpu.dot_dimension_numbers<[1], [0], [0], [1], [0, 0, 1, 1], [], []>} : vector<8x4xf32>, vector<4x256xf32>, vector<8x256xf32> -> vector<8x256xf32>
    %5 = vector.broadcast %1 : vector<8x1xf32> to vector<8x256xf32>
    %6 = arith.addf %4, %5 : vector<8x256xf32>
    %7 = arith.negf %6 : vector<8x256xf32>
    %8 = math.exp %7 : vector<8x256xf32>
    %cst_6 = arith.constant 1.000000e+00 : f32
    %9 = vector.broadcast %cst_6 : f32 to vector<8x256xf32>
    %10 = arith.addf %9, %8 : vector<8x256xf32>
    %11 = arith.divf %9, %10 : vector<8x256xf32>
    %c0_7 = arith.constant 0 : index
    %c0_8 = arith.constant 0 : index
    %c0_9 = arith.constant 0 : index
    %12 = vector.load %arg5[%c0_7, %c0_8, %c0_9] : memref<1x8x256xf32, #tpu.memory_space<vmem>>, vector<1x8x256xf32>
    %13 = vector.shape_cast %12 : vector<1x8x256xf32> to vector<8x256xf32>
    %14 = vector.shape_cast %11 : vector<8x256xf32> to vector<1x8x256xf32>
    tpu.vector_store %arg5[%c0_7, %c0_8, %c0_9], %14 {strides = array<i32>} : memref<1x8x256xf32, #tpu.memory_space<vmem>>, vector<1x8x256xf32>,
    return
  }
  func.func @transform_0(%arg0: i32, %arg1: i32) -> (i32, i32, i32) {
    %c0_i32 = arith.constant 0 : i32
    %c0_i32_0 = arith.constant 0 : i32
    return %arg0, %c0_i32, %arg1 : i32, i32, i32
  }
  func.func @transform_1(%arg0: i32, %arg1: i32) -> (i32, i32) {
    %c0_i32 = arith.constant 0 : i32
    %c0_i32_0 = arith.constant 0 : i32
    %c0_i32_1 = arith.constant 0 : i32
    return %c0_i32, %c0_i32_0 : i32, i32
  }
  func.func @transform_2(%arg0: i32, %arg1: i32) -> (i32, i32) {
    %c0_i32 = arith.constant 0 : i32
    %c0_i32_0 = arith.constant 0 : i32
    %c0_i32_1 = arith.constant 0 : i32
    return %c0_i32, %c0_i32_0 : i32, i32
  }
  func.func @transform_3(%arg0: i32, %arg1: i32) -> (i32, i32, i32) {
    %c0_i32 = arith.constant 0 : i32
    %c0_i32_0 = arith.constant 0 : i32
    return %arg0, %c0_i32, %arg1 : i32, i32, i32
  }
}

</mosaic_0001>

<bundles_post_ra>
// kernel: tpu_custom_call.1
= control target key start
LH: loop header
LB: loop body
LE: loop exit
PB: predicated region body
PF: predicated region fallthrough
CT: control target
= control target key end

     0   :  { %8 = vsyncpa [#allocation3], 0  ;;  %s690_s0 = inlined_call_operand.vmem [shape: f32[2,4,256], index: 0, kind: input, shape index: {}]   ;;  %s691_s1 = inlined_call_operand.vmem [shape: f32[8,4], index: 1, kind: input, shape index: {}]   ;;  %s692_s2 = inlined_call_operand.vmem [shape: f32[8,1], index: 2, kind: input, shape index: {}]   ;;  %s693_s3 = inlined_call_operand.hbm [shape: f32[2,8,256], index: 3, kind: output, shape index: {}]  }
   0x1   :  { %10 = vsyncpa [#allocation3 + $0x1], 0  ;;  %s583_s12 = smov 0   ;;  %s585_s13 = smov 0  }
   0x2   :  { %s587_s14 = smov 0   ;;  %s589_s15 = smov 0  }
   0x3   :  { %s591_s16 = smov 0   ;;  %s593_s17 = smov 0  }
   0x4 LB: > { %s396_s18 = sadd.s32 4294967295, %s560_s17   ;;  %s397_s19 = sadd.s32 4294967294, %s560_s17   ;;  %s560_s17 = sphi %s593_s17, %s16_s17   ;;  %s556_s16 = sphi %s591_s16, %s700_s16   ;;  %s552_s15 = sphi %s589_s15, %s699_s15   ;;  %s548_s14 = sphi %s587_s14, %s698_s14   ;;  %s544_s13 = sphi %s585_s13, %s697_s13   ;;  %s540_s12 = sphi %s583_s12, %s696_s12  }
   0x5   : > { %s28_s20 = sadd.s32 1, %s556_s16  ;;  %s107_s21 = sadd.s32 1, %s548_s14 }
   0x6   : > { %p30_p0 = scmp.ge.s32.totalorder %s28_s20, 2  ;;  %p117_p1 = scmp.ne.s32.totalorder %s548_s14, %s544_s13 }
   0x7   : > { %p118_p2 = scmp.eq.s32.totalorder %s396_s18, 1  ;;  %p123_p3 = scmp.ne.s32.totalorder %s544_s13, %s540_s12 }
   0x8   : > { %s702_s20 = smov (%p30_p0, %s28_s20), 0  ;;  %p124_p5 = scmp.eq.s32.totalorder %s397_s19, 1 }
   0x9   : > { %p623_p4 = por %p118_p2, %p117_p1  ;;  %s102_s23 = ssub.s32 %s556_s16, %s702_s20 }
   0xa   : > { %p400_p6 = scmp.ge.s32.totalorder %s560_s17, 1  ;;  %p105_p7 = scmp.eq.s32.totalorder %s102_s23, 0 }
   0xb   : > { %p630_p8 = por %p124_p5, %p123_p3  ;;  %p161_p9 = scmp.lt.s32.totalorder %s560_s17, 3 }
   0xc   : > { %s636_s25 = scalar_select %p105_p7, %s548_s14, %s107_s21  }
   0xd   : > { %p162_p10 = pnand %p400_p6, %p161_p9 }
   0xe   : > { %p190_p11 = scmp.lt.s32.totalorder (!%p162_p10), %s552_s15, 1  ;;  %s186_s8 = sand.u32 (!%p162_p10), 1, %s544_s13  }
   0xf   : > { %165 = sbr.rel (%p162_p10) target bundleno = 194 (0xc2), region = 32  ;;  %s401_s9 = sshll.u32 (!%p162_p10), %s186_s8, 4 }
  0x10   : > { %s416_s10 = sshll.u32 (!%p162_p10), %s552_s15, 4  ;;  %s188_s21 = scalar_lea.vmem (!%p162_p10), [#allocation2], %s401_s9 }
  0x11   : > { %s315_s19 = scalar_lea.hbm (!%p162_p10), %s693_s3, %s416_s10  ;;  %s317_s23 = sshll.u32 (!%p162_p10), %s188_s21, 4  ;;  %s318_s23 = int_to_ptr.vmem [resolvable:$true] %s317_s23 }
  0x12   : > { %s302_s26 = scalar_lea.sflag (!%p162_p10), [#allocation3], %s186_s8  ;;  %s502_s4 = scalar_lea.hbm (!%p162_p10), %s693_s3, 32 }
  0x14   : > { %v201_v0 = vld [vmem:[%s692_s2] sm:$0xff]  ;;  %v562_v1 = vmov 0   ;;  %s191_s28 = scalar_select %p190_p11, %s552_s15, 1  ;;  %vm216_vm0 = vcmask 1043456   ;;  %vm212_vm1 = vcmask 31744  }
  0x15   : > { %473 = vset.pattern.permute.xlu0 %v562_v1  ;;  %v200_v3 = vld [vmem:[%s691_s1] sm:$0xff]  ;;  %s319_s15 = sshll.u32 %s315_s19, 4  ;;  %s320_s15 = int_to_ptr.hbm [resolvable:$true] %s319_s15 }
  0x16   : > { %205 = vperm.xlu0 %473, %v201_v0   ;;  %s415_s29 = sshll.u32 %s191_s28, 3  ;;  %s496_s27 = sshra.s32 %s320_s15, 4  ;;  %s497_s27 = int_to_ptr.hbm [resolvable:$true] %s496_s27 }
  0x17   : > { %s197_s5 = scalar_lea.vmem %s690_s0, %s415_s29  ;;  %s498_s28 = scalar_lea.hbm %s497_s27, 16 }
  0x18   : > { %v202_v2 = vld [vmem:[%s197_s5] sm:$0xff]  ;;  %p499_p12 = scmp.ne.s32.totalorder %s497_s27, %s498_s28  ;;  %p503_p1 = scmp.lt.s32.totalorder %s497_s27, %s693_s3 }
  0x19   : > { %209 = vst [vmem:[#allocation1] ss:$2 sm:$0xff] %v202_v2  ;;  %p504_p2 = scmp.lt.s32.totalorder %s502_s4, %s498_s28 }
  0x1a   : > { %p500_p13 = pnand %p499_p12, %p623_p4 }
  0x1b   : > { %p505_p3 = por %p504_p2, %p503_p1 }
  0x1c   : > { %p501_p0 = pneg %p500_p13 }
  0x1e   : > { %p506_p5 = pnand %p505_p3, %p501_p0 }
  0x20   : > { %v210_v4 = vld.sshfl [vmem:[#allocation1] sm:$0xff pattern:$0x75316420]  ;;  %v211_v5 = vld.sshfl [vmem:[#allocation1 + $0x8] sm:$0xff pattern:$0x75316420] }
  0x21   : > { %404 = vmatpush.msk.msra.mxu0 %vm216_vm0, %v210_v4  ;;  %406 = vmatpush.msk.msra.mxu1 %vm216_vm0, %v211_v5 }
  0x22   : > { %405 = vmatmul.msk.f32.vlgmr.msra.gmra.mxu0 %vm212_vm1, %v200_v3  ;;  %407 = vmatmul.msk.f32.vlgmr.msra.gmra.mxu1 %vm212_vm1, %v200_v3 }
  0x88   : > { %v206_v6 = vpop.permute.xlu0 %205 }
  0x9f   : > { %v238_v7 = vpop.f32.mrf.mxu0  ;;  %v258_v8 = vpop.f32.mrf.mxu1 }
  0xa0   : > { %v239_v9 = vadd.f32 %v238_v7, %v206_v6  ;;  %v259_v10 = vadd.f32 %v258_v8, %v206_v6 }
  0xa2   : > { %v408_v11 = vmul.f32 -1.442695, %v239_v9  ;;  %v409_v12 = vmul.f32 -1.442695, %v259_v10 }
  0xa4   : > { %474 = vpow2.f32 %v408_v11 }
  0xa5   : > { %476 = vpow2.f32 %v409_v12 }
  0xaa   : > { %v475_v13 = vpop.eup %474 }
  0xab   : > { %v477_v14 = vpop.eup %476  ;;  %v267_v15 = vadd.f32 1.0, %v475_v13 }
  0xac   : > { %v268_v16 = vadd.f32 1.0, %v477_v14 }
  0xad   : > { %478 = vrcp.f32 %v267_v15  ;;  %v280_v23 = vand.u32 2147483648, %v267_v15  ;;  %v278_v25 = vand.u32 2147483647, %v267_v15  ;;  %vm274_vm4 = vweird.f32 %v267_v15 }
  0xae   : > { %480 = vrcp.f32 %v268_v16  ;;  %v295_v26 = vand.u32 2147483648, %v268_v16  ;;  %v293_v28 = vand.u32 2147483647, %v268_v16  ;;  %vm289_vm6 = vweird.f32 %v268_v16 }
  0xaf   : > { %v281_v30 = vor.u32 1.1754944e-38, %v280_v23  ;;  %vm279_vm7 = vcmp.eq.f32.partialorder %v278_v25, 8.507059e+37 }
  0xb0   : > { %v296_v33 = vor.u32 1.1754944e-38, %v295_v26  ;;  %vm294_vm9 = vcmp.eq.f32.partialorder %v293_v28, 8.507059e+37 }
  0xb3   : > { %v479_v17 = vpop.eup %478 }
  0xb4   : > { %v481_v18 = vpop.eup %480  ;;  %v270_v19 = vmul.f32 %v479_v17, %v267_v15  ;;  %vm275_vm2 = vweird.f32 %v479_v17 }
  0xb5   : > { %v285_v20 = vmul.f32 %v481_v18, %v268_v16  ;;  %vm290_vm3 = vweird.f32 %v481_v18  ;;  %vm276_vm5 = vmor %vm274_vm4, %vm275_vm2 }
  0xb6   : > { %v271_v21 = vsub.f32 1.0, %v270_v19  ;;  %vm291_vm8 = vmor %vm289_vm6, %vm290_vm3 }
  0xb7   : > { %v286_v22 = vsub.f32 1.0, %v285_v20 }
  0xb8   : > { %v272_v24 = vmul.f32 %v479_v17, %v271_v21 }
  0xb9   : > { %v287_v27 = vmul.f32 %v481_v18, %v286_v22 }
  0xba   : > { %v273_v29 = vadd.f32 %v479_v17, %v272_v24 }
  0xbb   : > { %v288_v31 = vadd.f32 %v481_v18, %v287_v27 }
  0xbc   : > { %v277_v32 = vsel %vm276_vm5, %v479_v17, %v273_v29 }
  0xbd   : > { %v282_v34 = vsel %vm279_vm7, %v281_v30, %v277_v32  ;;  %v292_v35 = vsel %vm291_vm8, %v481_v18, %v288_v31 }
  0xbe   : > { %v297_v36 = vsel %vm294_vm9, %v296_v33, %v292_v35  ;;  %299 = vst [vmem:[%s188_s21] sm:$0xff] %v282_v34 }
  0xbf   : > { %300 = vst [vmem:[%s188_s21 + $0x8] sm:$0xff] %v297_v36 }
  0xc0   : > { %509 = shalt.err (!%p506_p5)
}
  0xc1   : > { %417 = dma.vmem_to_hbm [thread:$0]  (%p623_p4), %s318_s23, 256, %s320_s15, %s302_s26  }
  0xc2 PF: > { %p423_p6 = scmp.ge.s32.totalorder %s560_s17, 2  ;;  %s331_s7 = sand.u32 1, %s540_s12  }
  0xc3   : > { %s332_s8 = scalar_lea.sflag [#allocation3], %s331_s7 }
  0xc4   : > { %p420_p7 = pnand %p423_p6, %p630_p8 }
  0xc6   : > { %p421_p9 = pneg %p420_p7 }
  0xc8   : > { %535 = dma.done.wait (%p421_p9), %s332_s8, 256  }
  0xc9   : > { %537 = vsyncadd (%p421_p9), %s332_s8, 4294967040  ;;  %s16_s17 = sadd.s32 1, %s560_s17   ;;  %s696_s12 = smov %s544_s13 }
  0xca   : > { %p13_p10 = scmp.ge.s32.totalorder %s16_s17, 4   ;;  %s697_s13 = smov %s548_s14 }
  0xcb   : > { %s698_s14 = smov %s636_s25  ;;  %s699_s15 = smov %s556_s16 }
  0xcc   : > { %s700_s16 = smov %s702_s20  ;;  %15 = sbr.rel (!%p13_p10) target bundleno = 4 (0x4), region = 67 }
  0xd1   :  { %338 = vsyncpa [#allocation3], 1 }
  0xd2   :  { %340 = vsyncpa [#allocation3 + $0x1], 1 }

</bundles_post_ra>
